<compile_context>
chip_gen: v6e
topology: v6e:2x2x1
jax: 0.10.0
libtpu: 0.0.40
codegen_flags: <defaults>
</compile_context>

<pallas_src>
import jax
import jax.numpy as jnp
from jax import lax
from jax.experimental import pallas as pl
from jax.experimental.pallas import tpu as pltpu

LEAKY_SLOPE = 0.01  # nn.LeakyReLU() default negative_slope


def _leaky(v):
    # Exactly equivalent to where(v > 0, v, slope*v) for 0 < slope < 1.
    return jnp.maximum(v, LEAKY_SLOPE * v)


def _round_up(a, b):
    return (a + b - 1) // b * b


def _build_kernel(n_set, hr1, hre, hrr):
    """n_set: set size N; hr1/hre/hrr: padded widths of fc1 / encoder / rho-hidden."""
    c0 = hr1 + hre  # lane offset of the small column table inside wp

    def kernel(x_ref, y_ref, b4_ref, wp_ref, out_ref):
        # x_ref, y_ref : (N, TB)   set elements on sublanes, batch on lanes
        # b4_ref (SMEM): (1,)      rho.fc2 bias
        # wp_ref (VMEM): (HRm, 128) packed weights:
        #   cols [0:hr1]        = W2^T / N   (rows 0:enc)
        #   cols [hr1:hr1+hre]  = W3^T       (rows 0:r)
        #   cols c0..c0+5       = w1_row0 | w1_row1 | b1 | b2 | b3 | w4
        w2t = wp_ref[0:hre, 0:hr1]               # (HRe, HR1)
        w3t = wp_ref[0:hrr, hr1:c0]              # (HRr, HRe)
        w1c0 = wp_ref[0:hr1, c0 + 0:c0 + 1]      # (HR1, 1)
        w1c1 = wp_ref[0:hr1, c0 + 1:c0 + 2]
        b1c = wp_ref[0:hr1, c0 + 2:c0 + 3]
        b2c = wp_ref[0:hre, c0 + 3:c0 + 4]       # (HRe, 1)
        b3c = wp_ref[0:hrr, c0 + 4:c0 + 5]       # (HRr, 1)
        w4c = wp_ref[0:hrr, c0 + 5:c0 + 6]       # (HRr, 1)
        b4 = b4_ref[0]

        # ---- phi.fc1 + LeakyReLU, summed over the set -----------------------
        # Features on sublanes -> pure VPU work, no XLU reductions, and only two
        # (HR1, TB) accumulators stay live (no spills).  The 1/N of the mean is
        # folded into w2t, so raw sums are enough.
        acc_f = None
        acc_b = None
        for n in range(n_set):
            x_n = x_ref[pl.ds(n, 1), :]          # (1, TB)
            y_n = y_ref[pl.ds(n, 1), :]
            a_f = _leaky(x_n * w1c0 + y_n * w1c1 + b1c)   # (HR1, TB)
            a_b = _leaky(y_n * w1c0 + x_n * w1c1 + b1c)   # swapped rows = cat(y, x)
            acc_f = a_f if acc_f is None else acc_f + a_f
            acc_b = a_b if acc_b is None else acc_b + a_b

        # ---- pooled head: phi.fc2 and rho.fc1 on the (otherwise idle) MXU ----
        def head(acc):
            z2 = jnp.dot(w2t, acc, preferred_element_type=jnp.float32) + b2c        # (HRe, TB)
            z3 = _leaky(jnp.dot(w3t, z2, preferred_element_type=jnp.float32) + b3c)  # (HRr, TB)
            # rho.fc2: tiny 16 -> 1 combine (single reduce per branch)
            return jnp.sum(w4c * z3, axis=0, keepdims=True) + b4                    # (1, TB)

        out_ref[0:1, :] = head(acc_f)   # forward branch
        out_ref[1:2, :] = head(acc_b)   # backward branch

    return kernel


def discriminator_forward(x, y, params, block_b=None):
    """x, y: (B, 1, N) channels-first, like the PyTorch module defaults."""
    w1, b1, w2, b2, w3, b3, w4, b4 = params
    B, cx, N = x.shape
    _, cy, _ = y.shape
    assert cx == 1 and cy == 1, "fused kernel assumes input_dim == output_dim == 1"
    # TODO(synk): input_dim/output_dim > 1 would need the generic concatenated-feature path.
    assert w1.shape[0] == 2, "phi.fc1 must take the 2 concatenated channels"

    h1 = w1.shape[1]      # 15  (phi.fc1 out, fixed in the PyTorch module)
    enc = w2.shape[1]     # encoder_dim (phi.fc2 out)
    r = w3.shape[1]       # 10  (rho.fc1 out, fixed in the PyTorch module)

    hr1 = _round_up(h1, 8)
    hre = _round_up(enc, 8)
    hrr = _round_up(r, 8)
    hrm = max(hr1, hre, hrr)
    c0 = hr1 + hre
    assert c0 + 6 <= 128, "packed weight table exceeds one 128-lane tile"
    assert N <= 512, "set size assumed small enough for a single VMEM block"
    # TODO(synk): for large N, tile the set dim as an 'arbitrary' grid axis with an
    # accumulator and budget vmem_limit_bytes (v7x only has 64 MiB VMEM).

    # Batch tile: lane-dense; 512 keeps the two (16, tb) f32 accumulators (plus
    # broadcast temporaries) comfortably inside the 64 vregs.
    bp0 = _round_up(B, 128)
    if block_b is not None:
        tb = block_b
    else:
        tb = min(512, bp0)
        # v7x megacore: keep >= 2 parallel grid blocks when the batch allows it.
        if bp0 > 128 and bp0 // tb < 2:
            tb = max(128, (bp0 // 2) // 128 * 128)
    bp = _round_up(bp0, tb)

    # Batch on the 128-lane axis, set elements on sublanes.
    xt = jnp.pad(x.reshape(B, N).T, ((0, 0), (0, bp - B)))   # (N, bp)
    yt = jnp.pad(y.reshape(B, N).T, ((0, 0), (0, bp - B)))

    # One resident VMEM table: W2^T/N | W3^T | w1 rows | b1 | b2 | b3 | w4.
    inv_n = 1.0 / float(N)
    wp = jnp.zeros((hrm, 128), jnp.float32)
    wp = wp.at[0:enc, 0:h1].set(w2.T * inv_n)          # mean folded into fc2 weight
    wp = wp.at[0:r, hr1:hr1 + enc].set(w3.T)
    wp = wp.at[0:h1, c0 + 0].set(w1[0])
    wp = wp.at[0:h1, c0 + 1].set(w1[1])
    wp = wp.at[0:h1, c0 + 2].set(b1.reshape(-1))
    wp = wp.at[0:enc, c0 + 3].set(b2.reshape(-1))
    wp = wp.at[0:r, c0 + 4].set(b3.reshape(-1))
    wp = wp.at[0:r, c0 + 5].set(w4.reshape(-1))
    b4s = jnp.asarray(b4, jnp.float32).reshape(-1)[:1]  # (1,) SMEM scalar

    kernel = _build_kernel(N, hr1, hre, hrr)
    out = pl.pallas_call(
        kernel,
        out_shape=jax.ShapeDtypeStruct((2, bp), jnp.float32),
        grid=(bp // tb,),
        in_specs=[
            pl.BlockSpec((N, tb), lambda i: (0, i)),
            pl.BlockSpec((N, tb), lambda i: (0, i)),
            pl.BlockSpec(memory_space=pltpu.MemorySpace.SMEM),
            pl.BlockSpec((hrm, 128), lambda i: (0, 0)),
        ],
        out_specs=pl.BlockSpec((2, tb), lambda i: (0, i)),
        compiler_params=pltpu.CompilerParams(
            dimension_semantics=("parallel",)),
    )(xt, yt, b4s, wp)

    y_f = out[0, :B].reshape(B, 1, 1)
    y_b = out[1, :B].reshape(B, 1, 1)
    return y_f, y_b


def init_params(key, input_dim=1, output_dim=1, encoder_dim=15):
    """Deterministic init mimicking nn.Linear defaults (U(-1/sqrt(fan_in), ..))."""
    d_in = input_dim + output_dim          # 2
    dims = [(d_in, 15), (15, encoder_dim), (encoder_dim, 10), (10, 1)]
    params = []
    for (fan_in, fan_out) in dims:
        key, kw, kb = jax.random.split(key, 3)
        bound = 1.0 / jnp.sqrt(fan_in)
        w = jax.random.uniform(kw, (fan_in, fan_out), jnp.float32, -bound, bound)
        b = jax.random.uniform(kb, (1, fan_out), jnp.float32, -bound, bound)
        params += [w, b]
    return tuple(params)


def _reference_forward(x, y, params):
    """Pure-JAX reference in the exact PyTorch op order (full-f32 matmuls)."""
    w1, b1, w2, b2, w3, b3, w4, b4 = params
    hp = lax.Precision.HIGHEST

    def branch(cat):
        h = jnp.transpose(cat, (0, 2, 1))                       # (B, N, 2)
        h = _leaky(jnp.matmul(h, w1, precision=hp) + b1)
        h = jnp.matmul(h, w2, precision=hp) + b2
        m = jnp.mean(h, axis=1, keepdims=True)
        r = _leaky(jnp.matmul(m, w3, precision=hp) + b3)
        return jnp.matmul(r, w4, precision=hp) + b4

    return (branch(jnp.concatenate((x, y), axis=1)),
            branch(jnp.concatenate((y, x), axis=1)))


if __name__ == "__main__":
    key = jax.random.PRNGKey(0)
    k_p, k_x, k_y, k_x2, k_y2 = jax.random.split(key, 5)

    params = init_params(k_p, input_dim=1, output_dim=1, encoder_dim=15)

    # Small sanity shape (module defaults: input_dim=output_dim=1, set size 8).
    B, C, N = 2, 1, 8
    x = jax.random.normal(k_x, (B, C, N), jnp.float32)
    y = jax.random.normal(k_y, (B, C, N), jnp.float32)
    y_f, y_b = discriminator_forward(x, y, params)
    jax.block_until_ready((y_f, y_b))
    ref_f, ref_b = _reference_forward(x, y, params)
    assert y_f.shape == (B, 1, 1) and y_b.shape == (B, 1, 1)
    assert jnp.allclose(y_f, ref_f, atol=1e-4), "forward branch mismatch"
    assert jnp.allclose(y_b, ref_b, atol=1e-4), "backward branch mismatch"

    # Multi-block / padded-batch path (exercises grid > 1 and lane padding).
    B2 = 260
    x2 = jax.random.normal(k_x2, (B2, C, N), jnp.float32)
    y2 = jax.random.normal(k_y2, (B2, C, N), jnp.float32)
    y_f2, y_b2 = discriminator_forward(x2, y2, params)
    jax.block_until_ready((y_f2, y_b2))
    ref_f2, ref_b2 = _reference_forward(x2, y2, params)
    assert jnp.allclose(y_f2, ref_f2, atol=1e-4), "forward branch mismatch (multi-block)"
    assert jnp.allclose(y_b2, ref_b2, atol=1e-4), "backward branch mismatch (multi-block)"

    print("KERNEL_OK")
</pallas_src>

<mosaic_0001>
module attributes {stable_mosaic.version = 11 : i64} {
  func.func @kernel(%arg0: i32, %arg1: memref<8x128xf32, #tpu.memory_space<vmem>>, %arg2: memref<8x128xf32, #tpu.memory_space<vmem>>, %arg3: memref<1xf32, #tpu.memory_space<smem>>, %arg4: memref<16x128xf32, #tpu.memory_space<vmem>>, %arg5: memref<2x128xf32, #tpu.memory_space<vmem>>) attributes {dimension_semantics = [#tpu.dimension_semantics<parallel>], iteration_bounds = array<i64: 1>, scalar_prefetch = 0 : i64, scratch_operands = 0 : i64, tpu.core_type = #tpu.core_type<tc>, window_params = [{transform_indices = @transform_0, window_bounds = array<i64: 8, 128>}, {transform_indices = @transform_1, window_bounds = array<i64: 8, 128>}, {transform_indices = @transform_2, window_bounds = array<i64: 1>}, {pipeline_mode = #tpu.pipeline_mode<synchronous>, transform_indices = @transform_3, window_bounds = array<i64: 16, 128>}, {transform_indices = @transform_4, window_bounds = array<i64: 2, 128>}]} {
    %c0 = arith.constant 0 : index
    %c0_0 = arith.constant 0 : index
    %0 = vector.load %arg4[%c0, %c0_0] : memref<16x128xf32, #tpu.memory_space<vmem>>, vector<16x16xf32>
    %c0_1 = arith.constant 0 : index
    %c16 = arith.constant 16 : index
    %1 = vector.load %arg4[%c0_1, %c16] : memref<16x128xf32, #tpu.memory_space<vmem>>, vector<16x16xf32>
    %c0_2 = arith.constant 0 : index
    %c32 = arith.constant 32 : index
    %2 = vector.load %arg4[%c0_2, %c32] : memref<16x128xf32, #tpu.memory_space<vmem>>, vector<16x1xf32>
    %c0_3 = arith.constant 0 : index
    %c33 = arith.constant 33 : index
    %3 = vector.load %arg4[%c0_3, %c33] : memref<16x128xf32, #tpu.memory_space<vmem>>, vector<16x1xf32>
    %c0_4 = arith.constant 0 : index
    %c34 = arith.constant 34 : index
    %4 = vector.load %arg4[%c0_4, %c34] : memref<16x128xf32, #tpu.memory_space<vmem>>, vector<16x1xf32>
    %c0_5 = arith.constant 0 : index
    %c35 = arith.constant 35 : index
    %5 = vector.load %arg4[%c0_5, %c35] : memref<16x128xf32, #tpu.memory_space<vmem>>, vector<16x1xf32>
    %c0_6 = arith.constant 0 : index
    %c36 = arith.constant 36 : index
    %6 = vector.load %arg4[%c0_6, %c36] : memref<16x128xf32, #tpu.memory_space<vmem>>, vector<16x1xf32>
    %c0_7 = arith.constant 0 : index
    %c37 = arith.constant 37 : index
    %7 = vector.load %arg4[%c0_7, %c37] : memref<16x128xf32, #tpu.memory_space<vmem>>, vector<16x1xf32>
    %c0_8 = arith.constant 0 : index
    %8 = memref.load %arg3[%c0_8] : memref<1xf32, #tpu.memory_space<smem>>
    %c0_9 = arith.constant 0 : index
    %c0_10 = arith.constant 0 : index
    %9 = vector.load %arg1[%c0_9, %c0_10] : memref<8x128xf32, #tpu.memory_space<vmem>>, vector<1x128xf32>
    %c0_11 = arith.constant 0 : index
    %c0_12 = arith.constant 0 : index
    %10 = vector.load %arg2[%c0_11, %c0_12] : memref<8x128xf32, #tpu.memory_space<vmem>>, vector<1x128xf32>
    %11 = vector.broadcast %9 : vector<1x128xf32> to vector<16x128xf32>
    %12 = vector.broadcast %2 : vector<16x1xf32> to vector<16x128xf32>
    %13 = arith.mulf %11, %12 : vector<16x128xf32>
    %14 = vector.broadcast %10 : vector<1x128xf32> to vector<16x128xf32>
    %15 = vector.broadcast %3 : vector<16x1xf32> to vector<16x128xf32>
    %16 = arith.mulf %14, %15 : vector<16x128xf32>
    %17 = arith.addf %13, %16 : vector<16x128xf32>
    %18 = vector.broadcast %4 : vector<16x1xf32> to vector<16x128xf32>
    %19 = arith.addf %17, %18 : vector<16x128xf32>
    %cst = arith.constant 0.00999999977 : f32
    %20 = vector.broadcast %cst : f32 to vector<16x128xf32>
    %21 = arith.mulf %20, %19 : vector<16x128xf32>
    %22 = arith.maximumf %19, %21 : vector<16x128xf32>
    %23 = vector.broadcast %10 : vector<1x128xf32> to vector<16x128xf32>
    %24 = vector.broadcast %2 : vector<16x1xf32> to vector<16x128xf32>
    %25 = arith.mulf %23, %24 : vector<16x128xf32>
    %26 = vector.broadcast %9 : vector<1x128xf32> to vector<16x128xf32>
    %27 = vector.broadcast %3 : vector<16x1xf32> to vector<16x128xf32>
    %28 = arith.mulf %26, %27 : vector<16x128xf32>
    %29 = arith.addf %25, %28 : vector<16x128xf32>
    %30 = vector.broadcast %4 : vector<16x1xf32> to vector<16x128xf32>
    %31 = arith.addf %29, %30 : vector<16x128xf32>
    %cst_13 = arith.constant 0.00999999977 : f32
    %32 = vector.broadcast %cst_13 : f32 to vector<16x128xf32>
    %33 = arith.mulf %32, %31 : vector<16x128xf32>
    %34 = arith.maximumf %31, %33 : vector<16x128xf32>
    %c1 = arith.constant 1 : index
    %c0_14 = arith.constant 0 : index
    %35 = vector.load %arg1[%c1, %c0_14] : memref<8x128xf32, #tpu.memory_space<vmem>>, vector<1x128xf32>
    %c1_15 = arith.constant 1 : index
    %c0_16 = arith.constant 0 : index
    %36 = vector.load %arg2[%c1_15, %c0_16] : memref<8x128xf32, #tpu.memory_space<vmem>>, vector<1x128xf32>
    %37 = vector.broadcast %35 : vector<1x128xf32> to vector<16x128xf32>
    %38 = vector.broadcast %2 : vector<16x1xf32> to vector<16x128xf32>
    %39 = arith.mulf %37, %38 : vector<16x128xf32>
    %40 = vector.broadcast %36 : vector<1x128xf32> to vector<16x128xf32>
    %41 = vector.broadcast %3 : vector<16x1xf32> to vector<16x128xf32>
    %42 = arith.mulf %40, %41 : vector<16x128xf32>
    %43 = arith.addf %39, %42 : vector<16x128xf32>
    %44 = vector.broadcast %4 : vector<16x1xf32> to vector<16x128xf32>
    %45 = arith.addf %43, %44 : vector<16x128xf32>
    %cst_17 = arith.constant 0.00999999977 : f32
    %46 = vector.broadcast %cst_17 : f32 to vector<16x128xf32>
    %47 = arith.mulf %46, %45 : vector<16x128xf32>
    %48 = arith.maximumf %45, %47 : vector<16x128xf32>
    %49 = vector.broadcast %36 : vector<1x128xf32> to vector<16x128xf32>
    %50 = vector.broadcast %2 : vector<16x1xf32> to vector<16x128xf32>
    %51 = arith.mulf %49, %50 : vector<16x128xf32>
    %52 = vector.broadcast %35 : vector<1x128xf32> to vector<16x128xf32>
    %53 = vector.broadcast %3 : vector<16x1xf32> to vector<16x128xf32>
    %54 = arith.mulf %52, %53 : vector<16x128xf32>
    %55 = arith.addf %51, %54 : vector<16x128xf32>
    %56 = vector.broadcast %4 : vector<16x1xf32> to vector<16x128xf32>
    %57 = arith.addf %55, %56 : vector<16x128xf32>
    %cst_18 = arith.constant 0.00999999977 : f32
    %58 = vector.broadcast %cst_18 : f32 to vector<16x128xf32>
    %59 = arith.mulf %58, %57 : vector<16x128xf32>
    %60 = arith.maximumf %57, %59 : vector<16x128xf32>
    %61 = arith.addf %22, %48 : vector<16x128xf32>
    %62 = arith.addf %34, %60 : vector<16x128xf32>
    %c2 = arith.constant 2 : index
    %c0_19 = arith.constant 0 : index
    %63 = vector.load %arg1[%c2, %c0_19] : memref<8x128xf32, #tpu.memory_space<vmem>>, vector<1x128xf32>
    %c2_20 = arith.constant 2 : index
    %c0_21 = arith.constant 0 : index
    %64 = vector.load %arg2[%c2_20, %c0_21] : memref<8x128xf32, #tpu.memory_space<vmem>>, vector<1x128xf32>
    %65 = vector.broadcast %63 : vector<1x128xf32> to vector<16x128xf32>
    %66 = vector.broadcast %2 : vector<16x1xf32> to vector<16x128xf32>
    %67 = arith.mulf %65, %66 : vector<16x128xf32>
    %68 = vector.broadcast %64 : vector<1x128xf32> to vector<16x128xf32>
    %69 = vector.broadcast %3 : vector<16x1xf32> to vector<16x128xf32>
    %70 = arith.mulf %68, %69 : vector<16x128xf32>
    %71 = arith.addf %67, %70 : vector<16x128xf32>
    %72 = vector.broadcast %4 : vector<16x1xf32> to vector<16x128xf32>
    %73 = arith.addf %71, %72 : vector<16x128xf32>
    %cst_22 = arith.constant 0.00999999977 : f32
    %74 = vector.broadcast %cst_22 : f32 to vector<16x128xf32>
    %75 = arith.mulf %74, %73 : vector<16x128xf32>
    %76 = arith.maximumf %73, %75 : vector<16x128xf32>
    %77 = vector.broadcast %64 : vector<1x128xf32> to vector<16x128xf32>
    %78 = vector.broadcast %2 : vector<16x1xf32> to vector<16x128xf32>
    %79 = arith.mulf %77, %78 : vector<16x128xf32>
    %80 = vector.broadcast %63 : vector<1x128xf32> to vector<16x128xf32>
    %81 = vector.broadcast %3 : vector<16x1xf32> to vector<16x128xf32>
    %82 = arith.mulf %80, %81 : vector<16x128xf32>
    %83 = arith.addf %79, %82 : vector<16x128xf32>
    %84 = vector.broadcast %4 : vector<16x1xf32> to vector<16x128xf32>
    %85 = arith.addf %83, %84 : vector<16x128xf32>
    %cst_23 = arith.constant 0.00999999977 : f32
    %86 = vector.broadcast %cst_23 : f32 to vector<16x128xf32>
    %87 = arith.mulf %86, %85 : vector<16x128xf32>
    %88 = arith.maximumf %85, %87 : vector<16x128xf32>
    %89 = arith.addf %61, %76 : vector<16x128xf32>
    %90 = arith.addf %62, %88 : vector<16x128xf32>
    %c3 = arith.constant 3 : index
    %c0_24 = arith.constant 0 : index
    %91 = vector.load %arg1[%c3, %c0_24] : memref<8x128xf32, #tpu.memory_space<vmem>>, vector<1x128xf32>
    %c3_25 = arith.constant 3 : index
    %c0_26 = arith.constant 0 : index
    %92 = vector.load %arg2[%c3_25, %c0_26] : memref<8x128xf32, #tpu.memory_space<vmem>>, vector<1x128xf32>
    %93 = vector.broadcast %91 : vector<1x128xf32> to vector<16x128xf32>
    %94 = vector.broadcast %2 : vector<16x1xf32> to vector<16x128xf32>
    %95 = arith.mulf %93, %94 : vector<16x128xf32>
    %96 = vector.broadcast %92 : vector<1x128xf32> to vector<16x128xf32>
    %97 = vector.broadcast %3 : vector<16x1xf32> to vector<16x128xf32>
    %98 = arith.mulf %96, %97 : vector<16x128xf32>
    %99 = arith.addf %95, %98 : vector<16x128xf32>
    %100 = vector.broadcast %4 : vector<16x1xf32> to vector<16x128xf32>
    %101 = arith.addf %99, %100 : vector<16x128xf32>
    %cst_27 = arith.constant 0.00999999977 : f32
    %102 = vector.broadcast %cst_27 : f32 to vector<16x128xf32>
    %103 = arith.mulf %102, %101 : vector<16x128xf32>
    %104 = arith.maximumf %101, %103 : vector<16x128xf32>
    %105 = vector.broadcast %92 : vector<1x128xf32> to vector<16x128xf32>
    %106 = vector.broadcast %2 : vector<16x1xf32> to vector<16x128xf32>
    %107 = arith.mulf %105, %106 : vector<16x128xf32>
    %108 = vector.broadcast %91 : vector<1x128xf32> to vector<16x128xf32>
    %109 = vector.broadcast %3 : vector<16x1xf32> to vector<16x128xf32>
    %110 = arith.mulf %108, %109 : vector<16x128xf32>
    %111 = arith.addf %107, %110 : vector<16x128xf32>
    %112 = vector.broadcast %4 : vector<16x1xf32> to vector<16x128xf32>
    %113 = arith.addf %111, %112 : vector<16x128xf32>
    %cst_28 = arith.constant 0.00999999977 : f32
    %114 = vector.broadcast %cst_28 : f32 to vector<16x128xf32>
    %115 = arith.mulf %114, %113 : vector<16x128xf32>
    %116 = arith.maximumf %113, %115 : vector<16x128xf32>
    %117 = arith.addf %89, %104 : vector<16x128xf32>
    %118 = arith.addf %90, %116 : vector<16x128xf32>
    %c4 = arith.constant 4 : index
    %c0_29 = arith.constant 0 : index
    %119 = vector.load %arg1[%c4, %c0_29] : memref<8x128xf32, #tpu.memory_space<vmem>>, vector<1x128xf32>
    %c4_30 = arith.constant 4 : index
    %c0_31 = arith.constant 0 : index
    %120 = vector.load %arg2[%c4_30, %c0_31] : memref<8x128xf32, #tpu.memory_space<vmem>>, vector<1x128xf32>
    %121 = vector.broadcast %119 : vector<1x128xf32> to vector<16x128xf32>
    %122 = vector.broadcast %2 : vector<16x1xf32> to vector<16x128xf32>
    %123 = arith.mulf %121, %122 : vector<16x128xf32>
    %124 = vector.broadcast %120 : vector<1x128xf32> to vector<16x128xf32>
    %125 = vector.broadcast %3 : vector<16x1xf32> to vector<16x128xf32>
    %126 = arith.mulf %124, %125 : vector<16x128xf32>
    %127 = arith.addf %123, %126 : vector<16x128xf32>
    %128 = vector.broadcast %4 : vector<16x1xf32> to vector<16x128xf32>
    %129 = arith.addf %127, %128 : vector<16x128xf32>
    %cst_32 = arith.constant 0.00999999977 : f32
    %130 = vector.broadcast %cst_32 : f32 to vector<16x128xf32>
    %131 = arith.mulf %130, %129 : vector<16x128xf32>
    %132 = arith.maximumf %129, %131 : vector<16x128xf32>
    %133 = vector.broadcast %120 : vector<1x128xf32> to vector<16x128xf32>
    %134 = vector.broadcast %2 : vector<16x1xf32> to vector<16x128xf32>
    %135 = arith.mulf %133, %134 : vector<16x128xf32>
    %136 = vector.broadcast %119 : vector<1x128xf32> to vector<16x128xf32>
    %137 = vector.broadcast %3 : vector<16x1xf32> to vector<16x128xf32>
    %138 = arith.mulf %136, %137 : vector<16x128xf32>
    %139 = arith.addf %135, %138 : vector<16x128xf32>
    %140 = vector.broadcast %4 : vector<16x1xf32> to vector<16x128xf32>
    %141 = arith.addf %139, %140 : vector<16x128xf32>
    %cst_33 = arith.constant 0.00999999977 : f32
    %142 = vector.broadcast %cst_33 : f32 to vector<16x128xf32>
    %143 = arith.mulf %142, %141 : vector<16x128xf32>
    %144 = arith.maximumf %141, %143 : vector<16x128xf32>
    %145 = arith.addf %117, %132 : vector<16x128xf32>
    %146 = arith.addf %118, %144 : vector<16x128xf32>
    %c5 = arith.constant 5 : index
    %c0_34 = arith.constant 0 : index
    %147 = vector.load %arg1[%c5, %c0_34] : memref<8x128xf32, #tpu.memory_space<vmem>>, vector<1x128xf32>
    %c5_35 = arith.constant 5 : index
    %c0_36 = arith.constant 0 : index
    %148 = vector.load %arg2[%c5_35, %c0_36] : memref<8x128xf32, #tpu.memory_space<vmem>>, vector<1x128xf32>
    %149 = vector.broadcast %147 : vector<1x128xf32> to vector<16x128xf32>
    %150 = vector.broadcast %2 : vector<16x1xf32> to vector<16x128xf32>
    %151 = arith.mulf %149, %150 : vector<16x128xf32>
    %152 = vector.broadcast %148 : vector<1x128xf32> to vector<16x128xf32>
    %153 = vector.broadcast %3 : vector<16x1xf32> to vector<16x128xf32>
    %154 = arith.mulf %152, %153 : vector<16x128xf32>
    %155 = arith.addf %151, %154 : vector<16x128xf32>
    %156 = vector.broadcast %4 : vector<16x1xf32> to vector<16x128xf32>
    %157 = arith.addf %155, %156 : vector<16x128xf32>
    %cst_37 = arith.constant 0.00999999977 : f32
    %158 = vector.broadcast %cst_37 : f32 to vector<16x128xf32>
    %159 = arith.mulf %158, %157 : vector<16x128xf32>
    %160 = arith.maximumf %157, %159 : vector<16x128xf32>
    %161 = vector.broadcast %148 : vector<1x128xf32> to vector<16x128xf32>
    %162 = vector.broadcast %2 : vector<16x1xf32> to vector<16x128xf32>
    %163 = arith.mulf %161, %162 : vector<16x128xf32>
    %164 = vector.broadcast %147 : vector<1x128xf32> to vector<16x128xf32>
    %165 = vector.broadcast %3 : vector<16x1xf32> to vector<16x128xf32>
    %166 = arith.mulf %164, %165 : vector<16x128xf32>
    %167 = arith.addf %163, %166 : vector<16x128xf32>
    %168 = vector.broadcast %4 : vector<16x1xf32> to vector<16x128xf32>
    %169 = arith.addf %167, %168 : vector<16x128xf32>
    %cst_38 = arith.constant 0.00999999977 : f32
    %170 = vector.broadcast %cst_38 : f32 to vector<16x128xf32>
    %171 = arith.mulf %170, %169 : vector<16x128xf32>
    %172 = arith.maximumf %169, %171 : vector<16x128xf32>
    %173 = arith.addf %145, %160 : vector<16x128xf32>
    %174 = arith.addf %146, %172 : vector<16x128xf32>
    %c6 = arith.constant 6 : index
    %c0_39 = arith.constant 0 : index
    %175 = vector.load %arg1[%c6, %c0_39] : memref<8x128xf32, #tpu.memory_space<vmem>>, vector<1x128xf32>
    %c6_40 = arith.constant 6 : index
    %c0_41 = arith.constant 0 : index
    %176 = vector.load %arg2[%c6_40, %c0_41] : memref<8x128xf32, #tpu.memory_space<vmem>>, vector<1x128xf32>
    %177 = vector.broadcast %175 : vector<1x128xf32> to vector<16x128xf32>
    %178 = vector.broadcast %2 : vector<16x1xf32> to vector<16x128xf32>
    %179 = arith.mulf %177, %178 : vector<16x128xf32>
    %180 = vector.broadcast %176 : vector<1x128xf32> to vector<16x128xf32>
    %181 = vector.broadcast %3 : vector<16x1xf32> to vector<16x128xf32>
    %182 = arith.mulf %180, %181 : vector<16x128xf32>
    %183 = arith.addf %179, %182 : vector<16x128xf32>
    %184 = vector.broadcast %4 : vector<16x1xf32> to vector<16x128xf32>
    %185 = arith.addf %183, %184 : vector<16x128xf32>
    %cst_42 = arith.constant 0.00999999977 : f32
    %186 = vector.broadcast %cst_42 : f32 to vector<16x128xf32>
    %187 = arith.mulf %186, %185 : vector<16x128xf32>
    %188 = arith.maximumf %185, %187 : vector<16x128xf32>
    %189 = vector.broadcast %176 : vector<1x128xf32> to vector<16x128xf32>
    %190 = vector.broadcast %2 : vector<16x1xf32> to vector<16x128xf32>
    %191 = arith.mulf %189, %190 : vector<16x128xf32>
    %192 = vector.broadcast %175 : vector<1x128xf32> to vector<16x128xf32>
    %193 = vector.broadcast %3 : vector<16x1xf32> to vector<16x128xf32>
    %194 = arith.mulf %192, %193 : vector<16x128xf32>
    %195 = arith.addf %191, %194 : vector<16x128xf32>
    %196 = vector.broadcast %4 : vector<16x1xf32> to vector<16x128xf32>
    %197 = arith.addf %195, %196 : vector<16x128xf32>
    %cst_43 = arith.constant 0.00999999977 : f32
    %198 = vector.broadcast %cst_43 : f32 to vector<16x128xf32>
    %199 = arith.mulf %198, %197 : vector<16x128xf32>
    %200 = arith.maximumf %197, %199 : vector<16x128xf32>
    %201 = arith.addf %173, %188 : vector<16x128xf32>
    %202 = arith.addf %174, %200 : vector<16x128xf32>
    %c7 = arith.constant 7 : index
    %c0_44 = arith.constant 0 : index
    %203 = vector.load %arg1[%c7, %c0_44] : memref<8x128xf32, #tpu.memory_space<vmem>>, vector<1x128xf32>
    %c7_45 = arith.constant 7 : index
    %c0_46 = arith.constant 0 : index
    %204 = vector.load %arg2[%c7_45, %c0_46] : memref<8x128xf32, #tpu.memory_space<vmem>>, vector<1x128xf32>
    %205 = vector.broadcast %203 : vector<1x128xf32> to vector<16x128xf32>
    %206 = vector.broadcast %2 : vector<16x1xf32> to vector<16x128xf32>
    %207 = arith.mulf %205, %206 : vector<16x128xf32>
    %208 = vector.broadcast %204 : vector<1x128xf32> to vector<16x128xf32>
    %209 = vector.broadcast %3 : vector<16x1xf32> to vector<16x128xf32>
    %210 = arith.mulf %208, %209 : vector<16x128xf32>
    %211 = arith.addf %207, %210 : vector<16x128xf32>
    %212 = vector.broadcast %4 : vector<16x1xf32> to vector<16x128xf32>
    %213 = arith.addf %211, %212 : vector<16x128xf32>
    %cst_47 = arith.constant 0.00999999977 : f32
    %214 = vector.broadcast %cst_47 : f32 to vector<16x128xf32>
    %215 = arith.mulf %214, %213 : vector<16x128xf32>
    %216 = arith.maximumf %213, %215 : vector<16x128xf32>
    %217 = vector.broadcast %204 : vector<1x128xf32> to vector<16x128xf32>
    %218 = vector.broadcast %2 : vector<16x1xf32> to vector<16x128xf32>
    %219 = arith.mulf %217, %218 : vector<16x128xf32>
    %220 = vector.broadcast %203 : vector<1x128xf32> to vector<16x128xf32>
    %221 = vector.broadcast %3 : vector<16x1xf32> to vector<16x128xf32>
    %222 = arith.mulf %220, %221 : vector<16x128xf32>
    %223 = arith.addf %219, %222 : vector<16x128xf32>
    %224 = vector.broadcast %4 : vector<16x1xf32> to vector<16x128xf32>
    %225 = arith.addf %223, %224 : vector<16x128xf32>
    %cst_48 = arith.constant 0.00999999977 : f32
    %226 = vector.broadcast %cst_48 : f32 to vector<16x128xf32>
    %227 = arith.mulf %226, %225 : vector<16x128xf32>
    %228 = arith.maximumf %225, %227 : vector<16x128xf32>
    %229 = arith.addf %201, %216 : vector<16x128xf32>
    %230 = arith.addf %202, %228 : vector<16x128xf32>
    %cst_49 = arith.constant dense<0.000000e+00> : vector<16x128xf32>
    %231 = tpu.matmul %0, %229, %cst_49 {dimension_numbers = #tpu.dot_dimension_numbers<[1], [0], [0], [1], [0, 0, 1, 1], [], []>} : vector<16x16xf32>, vector<16x128xf32>, vector<16x128xf32> -> vector<16x128xf32>
    %232 = vector.broadcast %5 : vector<16x1xf32> to vector<16x128xf32>
    %233 = arith.addf %231, %232 : vector<16x128xf32>
    %cst_50 = arith.constant dense<0.000000e+00> : vector<16x128xf32>
    %234 = tpu.matmul %1, %233, %cst_50 {dimension_numbers = #tpu.dot_dimension_numbers<[1], [0], [0], [1], [0, 0, 1, 1], [], []>} : vector<16x16xf32>, vector<16x128xf32>, vector<16x128xf32> -> vector<16x128xf32>
    %235 = vector.broadcast %6 : vector<16x1xf32> to vector<16x128xf32>
    %236 = arith.addf %234, %235 : vector<16x128xf32>
    %cst_51 = arith.constant 0.00999999977 : f32
    %237 = vector.broadcast %cst_51 : f32 to vector<16x128xf32>
    %238 = arith.mulf %237, %236 : vector<16x128xf32>
    %239 = arith.maximumf %236, %238 : vector<16x128xf32>
    %240 = vector.broadcast %7 : vector<16x1xf32> to vector<16x128xf32>
    %241 = arith.mulf %240, %239 : vector<16x128xf32>
    %cst_52 = arith.constant dense<0.000000e+00> : vector<128xf32>
    %242 = vector.multi_reduction <add>, %241, %cst_52 [0] : vector<16x128xf32> to vector<128xf32>
    %243 = vector.shape_cast %242 : vector<128xf32> to vector<1x128xf32>
    %244 = vector.broadcast %8 : f32 to vector<1x128xf32>
    %245 = arith.addf %243, %244 : vector<1x128xf32>
    %c0_53 = arith.constant 0 : index
    %c0_54 = arith.constant 0 : index
    %246 = vector.load %arg5[%c0_53, %c0_54] : memref<2x128xf32, #tpu.memory_space<vmem>>, vector<1x128xf32>
    tpu.vector_store %arg5[%c0_53, %c0_54], %245 {strides = array<i32>} : memref<2x128xf32, #tpu.memory_space<vmem>>, vector<1x128xf32>,
    %cst_55 = arith.constant dense<0.000000e+00> : vector<16x128xf32>
    %247 = tpu.matmul %0, %230, %cst_55 {dimension_numbers = #tpu.dot_dimension_numbers<[1], [0], [0], [1], [0, 0, 1, 1], [], []>} : vector<16x16xf32>, vector<16x128xf32>, vector<16x128xf32> -> vector<16x128xf32>
    %248 = vector.broadcast %5 : vector<16x1xf32> to vector<16x128xf32>
    %249 = arith.addf %247, %248 : vector<16x128xf32>
    %cst_56 = arith.constant dense<0.000000e+00> : vector<16x128xf32>
    %250 = tpu.matmul %1, %249, %cst_56 {dimension_numbers = #tpu.dot_dimension_numbers<[1], [0], [0], [1], [0, 0, 1, 1], [], []>} : vector<16x16xf32>, vector<16x128xf32>, vector<16x128xf32> -> vector<16x128xf32>
    %251 = vector.broadcast %6 : vector<16x1xf32> to vector<16x128xf32>
    %252 = arith.addf %250, %251 : vector<16x128xf32>
    %cst_57 = arith.constant 0.00999999977 : f32
    %253 = vector.broadcast %cst_57 : f32 to vector<16x128xf32>
    %254 = arith.mulf %253, %252 : vector<16x128xf32>
    %255 = arith.maximumf %252, %254 : vector<16x128xf32>
    %256 = vector.broadcast %7 : vector<16x1xf32> to vector<16x128xf32>
    %257 = arith.mulf %256, %255 : vector<16x128xf32>
    %cst_58 = arith.constant dense<0.000000e+00> : vector<128xf32>
    %258 = vector.multi_reduction <add>, %257, %cst_58 [0] : vector<16x128xf32> to vector<128xf32>
    %259 = vector.shape_cast %258 : vector<128xf32> to vector<1x128xf32>
    %260 = vector.broadcast %8 : f32 to vector<1x128xf32>
    %261 = arith.addf %259, %260 : vector<1x128xf32>
    %c1_59 = arith.constant 1 : index
    %c0_60 = arith.constant 0 : index
    %262 = vector.load %arg5[%c1_59, %c0_60] : memref<2x128xf32, #tpu.memory_space<vmem>>, vector<1x128xf32>
    tpu.vector_store %arg5[%c1_59, %c0_60], %261 {strides = array<i32>} : memref<2x128xf32, #tpu.memory_space<vmem>>, vector<1x128xf32>,
    return
  }
  func.func @transform_0(%arg0: i32) -> (i32, i32) {
    %c0_i32 = arith.constant 0 : i32
    %c0_i32_0 = arith.constant 0 : i32
    return %c0_i32, %arg0 : i32, i32
  }
  func.func @transform_1(%arg0: i32) -> (i32, i32) {
    %c0_i32 = arith.constant 0 : i32
    %c0_i32_0 = arith.constant 0 : i32
    return %c0_i32, %arg0 : i32, i32
  }
  func.func @transform_2(%arg0: i32) -> i32 {
    %c0_i32 = arith.constant 0 : i32
    %c0_i32_0 = arith.constant 0 : i32
    return %c0_i32 : i32
  }
  func.func @transform_3(%arg0: i32) -> (i32, i32) {
    %c0_i32 = arith.constant 0 : i32
    %c0_i32_0 = arith.constant 0 : i32
    %c0_i32_1 = arith.constant 0 : i32
    return %c0_i32, %c0_i32_0 : i32, i32
  }
  func.func @transform_4(%arg0: i32) -> (i32, i32) {
    %c0_i32 = arith.constant 0 : i32
    %c0_i32_0 = arith.constant 0 : i32
    return %c0_i32, %arg0 : i32, i32
  }
}

</mosaic_0001>

<bundles_post_ra>
// kernel: tpu_custom_call.1
= control target key start
LH: loop header
LB: loop body
LE: loop exit
PB: predicated region body
PF: predicated region fallthrough
CT: control target
= control target key end

     0   :  { %10 = vsyncpa [#allocation4], 0  ;;  %s1268_s0 = inlined_call_operand.hbm [shape: f32[8,128], index: 0, kind: input, shape index: {}]   ;;  %s1269_s1 = inlined_call_operand.hbm [shape: f32[8,128], index: 1, kind: input, shape index: {}]   ;;  %s1270_s2 = inlined_call_operand.<no memory space> [shape: f32[1], index: 2, kind: input, shape index: {}]   ;;  %s1271_s3 = inlined_call_operand.hbm [shape: f32[16,128], index: 3, kind: input, shape index: {}]   ;;  %s1272_s4 = inlined_call_operand.hbm [shape: f32[2,128], index: 4, kind: output, shape index: {}]  }
   0x1   :  { %11 = vsyncpa [#allocation7], 0 }
   0x2   :  { %12 = vsyncpa [#allocation5], 0  ;;  %s947_s15 = smov [#allocation6]   ;;  %s948_s17 = smov [#allocation3]  }
   0x3   :  { %s29_s16 = sshll.u32 %s947_s15, 4  ;;  %s19_s18 = sshll.u32 %s948_s17, 4  ;;  %s30_s16 = int_to_ptr.vmem [resolvable:$true] %s29_s16  ;;  %s20_s18 = int_to_ptr.vmem [resolvable:$true] %s19_s18 }
   0x4   :  { %s869_s19 = scalar_lea.vmem %s30_s16, 128  ;;  %p874_p1 = scmp.lt.s32.totalorder %s30_s16, %s30_s16 }
   0x5   :  { %p870_p0 = scmp.ne.s32.totalorder %s30_s16, %s869_s19  ;;  %p875_p2 = scmp.lt.s32.totalorder %s869_s19, %s869_s19 }
   0x7   :  { %p876_p3 = por %p875_p2, %p874_p1 }
   0x9   :  { %p877_p4 = pnand %p876_p3, %p870_p0 }
   0xb   :  { %880 = shalt.err (!%p877_p4)
}
   0xc   :  { %32 = dma.hbm_to_vmem [thread:$0]  %s1269_s1, 128, %s30_s16, [#allocation7]  }
   0xd   :  { %s889_s22 = scalar_lea.vmem %s20_s18, 128  ;;  %p894_p6 = scmp.lt.s32.totalorder %s20_s18, %s20_s18 }
   0xe   :  { %p890_p5 = scmp.ne.s32.totalorder %s20_s18, %s889_s22  ;;  %p895_p7 = scmp.lt.s32.totalorder %s889_s22, %s889_s22 }
  0x10   :  { %p896_p8 = por %p895_p7, %p894_p6 }
  0x12   :  { %p897_p9 = pnand %p896_p8, %p890_p5 }
  0x14   :  { %900 = shalt.err (!%p897_p9)
}
  0x15   :  { %22 = dma.hbm_to_vmem [thread:$0]  %s1268_s0, 128, %s20_s18, [#allocation4]  }
  0x16   :  { %s949_s25 = smov [#allocation8]  }
  0x17   :  { %s40_s26 = sshll.u32 %s949_s25, 4  ;;  %s41_s26 = int_to_ptr.vmem [resolvable:$true] %s40_s26 }
  0x18   :  { %s909_s27 = scalar_lea.vmem %s41_s26, 256  ;;  %p914_p11 = scmp.lt.s32.totalorder %s41_s26, %s41_s26 }
  0x19   :  { %p910_p10 = scmp.ne.s32.totalorder %s41_s26, %s909_s27  ;;  %p915_p12 = scmp.lt.s32.totalorder %s909_s27, %s909_s27 }
  0x1b   :  { %p916_p13 = por %p915_p12, %p914_p11 }
  0x1d   :  { %p917_p0 = pnand %p916_p13, %p910_p10 }
  0x1f   :  { %920 = shalt.err (!%p917_p0)
}
  0x20   :  { %s950_s1 = smov 128   ;;  %s951_s28 = smov 8  }
  0x21   :  { %46 = dma.hbm_to_vmem [thread:$0]  %s1271_s3, 256, %s41_s26, [#allocation7], %s950_s1, %s950_s1, %s951_s28  }
  0x22   :  { %941 = dma.done.wait [#allocation4], 128  }
  0x23   :  { %942 = vsyncadd [#allocation4], 4294967168 }
  0x24   :  { %943 = dma.done.wait [#allocation7], 384  }
  0x25   :  { %944 = vsyncadd [#allocation7], 4294966912  ;;  %v952_v0 = vmov 32   ;;  %v994_v1 = vld [vmem:[#allocation8 + $0x8] sm:$0xff]  ;;  %v996_v2 = vld [vmem:[#allocation8] sm:$0xff]  ;;  %v953_v3 = vmov 33  }
  0x26   :  { %852 = vset.pattern.permute.xlu1 %v952_v0  ;;  %850 = vset.pattern.permute.xlu0 %v952_v0  ;;  %1279 = vst [vmem:[#allocation13_spill] sm:$0xff] %v994_v1  ;;  %1280 = vst [vmem:[#allocation14_spill] sm:$0xff] %v996_v2  ;;  %v954_v4 = vmov 34   ;;  %vm393_vm0 = vcmask 130048   ;;  %v955_v5 = vmov 35   ;;  %s956_s0 = smov 112  }
  0x27   :  { %72 = vperm.xlu0 %850, %v994_v1   ;;  %67 = vperm.xlu1 %852, %v996_v2   ;;  %v1010_v6 = vld [vmem:[#allocation3] ss:$0 sm:$0xff]  ;;  %v1012_v7 = vld [vmem:[#allocation3 + $0x1] ss:$0 sm:$0xff]  ;;  %v1014_v8 = vld [vmem:[#allocation3 + $0x2] ss:$0 sm:$0xff] }
  0x28   :  { %813 = vmatprep.mubr.msk.f32.mxu0 %vm393_vm0, %v996_v2  ;;  %v1016_v9 = vld [vmem:[#allocation3 + $0x3] ss:$0 sm:$0xff]  ;;  %v1018_v10 = vld [vmem:[#allocation3 + $0x4] ss:$0 sm:$0xff]  ;;  %v1020_v11 = vld [vmem:[#allocation3 + $0x5] ss:$0 sm:$0xff] }
  0x29   :  { %v1022_v12 = vld [vmem:[#allocation3 + $0x6] ss:$0 sm:$0xff]  ;;  %v1024_v13 = vld [vmem:[#allocation3 + $0x7] ss:$0 sm:$0xff]  ;;  %v1030_v16 = vld [vmem:[#allocation6] ss:$0 sm:$0xff] }
  0x2a   :  { %v1040_v21 = vld [vmem:[#allocation6 + $0x1] ss:$0 sm:$0xff]  ;;  %v1042_v22 = vld [vmem:[#allocation6 + $0x2] ss:$0 sm:$0xff]  ;;  %v1044_v23 = vld [vmem:[#allocation6 + $0x3] ss:$0 sm:$0xff] }
  0x2b   :  { %851 = vset.pattern.permute.xlu0 %v953_v3  ;;  %853 = vset.pattern.permute.xlu1 %v953_v3  ;;  %1281 = vst [vmem:[#allocation15_spill] sm:$0xff] %v1042_v22  ;;  %1282 = vst [vmem:[#allocation16_spill] sm:$0xff] %v1044_v23  ;;  %v1086_v38 = vld [vmem:[#allocation6 + $0x4] ss:$0 sm:$0xff]  ;;  %v1112_v47 = vld [vmem:[#allocation6 + $0x5] ss:$0 sm:$0xff] }
  0x2c   :  { %86 = vperm.xlu0 %851, %v994_v1   ;;  %82 = vperm.xlu1 %853, %v996_v2   ;;  %v1114_v48 = vld [vmem:[#allocation6 + $0x6] ss:$0 sm:$0xff]  ;;  %v1116_v49 = vld [vmem:[#allocation6 + $0x7] ss:$0 sm:$0xff] }
  0x30   :  { %855 = vset.pattern.permute.xlu0 %v954_v4  ;;  %854 = vset.pattern.permute.xlu1 %v954_v4 }
  0x31   :  { %94 = vperm.xlu0 %855, %v996_v2   ;;  %98 = vperm.xlu1 %854, %v994_v1  }
  0x35   :  { %856 = vset.pattern.permute.xlu1 %v955_v5  ;;  %481 = vrot.lane.b32.xlu0 %v996_v2, %s956_s0 }
  0x36   :  { %390 = vperm.xlu1 %856, %v994_v1  }
  0x3a   :  { %386 = vperm.xlu1 %856, %v996_v2  }
  0x3e   :  { %483 = vrot.lane.b32.xlu1 %v994_v1, %s956_s0 }
  0xa2   :  { %v1026_v14 = vpop.permute.xlu1 %67  ;;  %v1028_v15 = vpop.permute.xlu0 %72 }
  0xa3   :  { %v76_v17 = vmul.f32 %v1010_v6, %v1028_v15  ;;  %v126_v18 = vmul.f32 %v1012_v7, %v1028_v15  ;;  %v164_v19 = vmul.f32 %v1014_v8, %v1028_v15  ;;  %v202_v20 = vmul.f32 %v1016_v9, %v1028_v15 }
  0xa4   :  { %v240_v24 = vmul.f32 %v1018_v10, %v1028_v15  ;;  %v278_v25 = vmul.f32 %v1020_v11, %v1028_v15  ;;  %v316_v26 = vmul.f32 %v1022_v12, %v1028_v15  ;;  %v354_v27 = vmul.f32 %v1024_v13, %v1028_v15 }
  0xa5   :  { %v75_v28 = vmul.f32 %v1010_v6, %v1026_v14  ;;  %v125_v29 = vmul.f32 %v1012_v7, %v1026_v14  ;;  %v1060_v30 = vmul.f32 %v1014_v8, %v1026_v14  ;;  %v1064_v31 = vmul.f32 %v1016_v9, %v1026_v14 }
  0xa6   :  { %v1068_v32 = vmul.f32 %v1018_v10, %v1026_v14  ;;  %v1072_v33 = vmul.f32 %v1020_v11, %v1026_v14  ;;  %v1076_v34 = vmul.f32 %v1022_v12, %v1026_v14  ;;  %v1080_v35 = vmul.f32 %v1024_v13, %v1026_v14 }
  0xa7   :  { %v1082_v36 = vpop.permute.xlu0 %86  ;;  %v1084_v37 = vpop.permute.xlu1 %82  ;;  %v1090_v39 = vmul.f32 %v1030_v16, %v1028_v15  ;;  %v1094_v40 = vmul.f32 %v1040_v21, %v1028_v15  ;;  %v1098_v41 = vmul.f32 %v1042_v22, %v1028_v15  ;;  %v1102_v42 = vmul.f32 %v1044_v23, %v1028_v15 }
  0xa8   :  { %v90_v43 = vmul.f32 %v1030_v16, %v1082_v36  ;;  %v132_v44 = vmul.f32 %v1040_v21, %v1082_v36  ;;  %v170_v45 = vmul.f32 %v1042_v22, %v1082_v36  ;;  %v208_v46 = vmul.f32 %v1044_v23, %v1082_v36 }
  0xa9   :  { %v246_v50 = vmul.f32 %v1086_v38, %v1082_v36  ;;  %v284_v51 = vmul.f32 %v1112_v47, %v1082_v36  ;;  %v322_v52 = vmul.f32 %v1114_v48, %v1082_v36  ;;  %v360_v53 = vmul.f32 %v1116_v49, %v1082_v36 }
  0xaa   :  { %v92_v54 = vadd.f32 %v90_v43, %v76_v17  ;;  %v134_v55 = vadd.f32 %v132_v44, %v126_v18  ;;  %v172_v56 = vadd.f32 %v170_v45, %v164_v19  ;;  %v210_v57 = vadd.f32 %v208_v46, %v202_v20 }
  0xab   :  { %v248_v58 = vadd.f32 %v246_v50, %v240_v24  ;;  %v286_v59 = vadd.f32 %v284_v51, %v278_v25  ;;  %v324_v60 = vadd.f32 %v322_v52, %v316_v26  ;;  %v362_v61 = vadd.f32 %v360_v53, %v354_v27 }
  0xac   :  { %v1126_v62 = vpop.permute.xlu1 %98  ;;  %v89_v63 = vmul.f32 %v1030_v16, %v1084_v37  ;;  %v131_v0 = vmul.f32 %v1040_v21, %v1084_v37  ;;  %v169_v3 = vmul.f32 %v1042_v22, %v1084_v37  ;;  %v207_v4 = vmul.f32 %v1044_v23, %v1084_v37  ;;  %v1146_v46 = vpop.permute.xlu0 %94 }
  0xad   :  { %v102_v5 = vadd.f32 %v1126_v62, %v92_v54  ;;  %v136_v17 = vadd.f32 %v134_v55, %v1126_v62  ;;  %v174_v18 = vadd.f32 %v172_v56, %v1126_v62  ;;  %v212_v19 = vadd.f32 %v210_v57, %v1126_v62 }
  0xae   :  { %v250_v20 = vadd.f32 %v248_v58, %v1126_v62  ;;  %v288_v24 = vadd.f32 %v286_v59, %v1126_v62  ;;  %v326_v25 = vadd.f32 %v324_v60, %v1126_v62  ;;  %v1144_v26 = vadd.f32 %v362_v61, %v1126_v62 }
  0xaf   :  { %v104_v27 = vmul.f32 0.01, %v102_v5  ;;  %v138_v43 = vmul.f32 0.01, %v136_v17  ;;  %v176_v44 = vmul.f32 0.01, %v174_v18  ;;  %v91_v45 = vadd.f32 %v89_v63, %v75_v28 }
  0xb0   :  { %v214_v50 = vmul.f32 0.01, %v212_v19  ;;  %v252_v51 = vmul.f32 0.01, %v250_v20  ;;  %v290_v52 = vmul.f32 0.01, %v288_v24  ;;  %v133_v53 = vadd.f32 %v131_v0, %v125_v29 }
  0xb1   :  { %v106_v54 = vmax.f32 %v102_v5, %v104_v27  ;;  %v140_v55 = vmax.f32 %v136_v17, %v138_v43  ;;  %v178_v56 = vmax.f32 %v174_v18, %v176_v44  ;;  %v328_v57 = vmul.f32 0.01, %v326_v25 }
  0xb2   :  { %v216_v58 = vmax.f32 %v212_v19, %v214_v50  ;;  %v254_v59 = vmax.f32 %v250_v20, %v252_v51  ;;  %v292_v60 = vmax.f32 %v288_v24, %v290_v52  ;;  %v366_v61 = vmul.f32 0.01, %v1144_v26 }
  0xb3   :  { %v154_v23 = vadd.f32 %v140_v55, %v106_v54  ;;  %v330_v2 = vmax.f32 %v326_v25, %v328_v57  ;;  %v101_v22 = vadd.f32 %v1146_v46, %v91_v45  ;;  %v135_v28 = vadd.f32 %v133_v53, %v1146_v46 }
  0xb4   :  { %v368_v63 = vmax.f32 %v1144_v26, %v366_v61  ;;  %v171_v1 = vadd.f32 %v169_v3, %v1060_v30  ;;  %v209_v29 = vadd.f32 %v207_v4, %v1064_v31  ;;  %v245_v0 = vmul.f32 %v1086_v38, %v1084_v37 }
  0xb5   :  { %v192_v5 = vadd.f32 %v178_v56, %v154_v23  ;;  %v103_v17 = vmul.f32 0.01, %v101_v22  ;;  %v137_v18 = vmul.f32 0.01, %v135_v28  ;;  %v283_v19 = vmul.f32 %v1112_v47, %v1084_v37 }
  0xb6   :  { %v173_v20 = vadd.f32 %v171_v1, %v1146_v46  ;;  %v211_v24 = vadd.f32 %v209_v29, %v1146_v46  ;;  %v247_v25 = vadd.f32 %v245_v0, %v1068_v32  ;;  %v321_v30 = vmul.f32 %v1114_v48, %v1084_v37 }
  0xb7   :  { %v230_v3 = vadd.f32 %v216_v58, %v192_v5  ;;  %v105_v31 = vmax.f32 %v101_v22, %v103_v17  ;;  %v139_v4 = vmax.f32 %v135_v28, %v137_v18  ;;  %v285_v26 = vadd.f32 %v283_v19, %v1072_v33 }
  0xb8   :  { %v175_v23 = vmul.f32 0.01, %v173_v20  ;;  %v213_v27 = vmul.f32 0.01, %v211_v24  ;;  %v249_v43 = vadd.f32 %v247_v25, %v1146_v46  ;;  %v323_v44 = vadd.f32 %v321_v30, %v1076_v34 }
  0xb9   :  { %v268_v45 = vadd.f32 %v254_v59, %v230_v3  ;;  %v153_v1 = vadd.f32 %v139_v4, %v105_v31  ;;  %v287_v50 = vadd.f32 %v285_v26, %v1146_v46  ;;  %v359_v32 = vmul.f32 %v1116_v49, %v1084_v37 }
  0xba   :  { %v177_v51 = vmax.f32 %v173_v20, %v175_v23  ;;  %v215_v52 = vmax.f32 %v211_v24, %v213_v27  ;;  %v251_v53 = vmul.f32 0.01, %v249_v43  ;;  %v325_v22 = vadd.f32 %v323_v44, %v1146_v46 }
  0xbb   :  { %v306_v54 = vadd.f32 %v292_v60, %v268_v45  ;;  %v289_v33 = vmul.f32 0.01, %v287_v50  ;;  %v361_v55 = vadd.f32 %v359_v32, %v1080_v35  ;;  %v110_v56 = vmul.f32 %v1010_v6, %v1082_v36 }
  0xbc   :  { %v191_v34 = vadd.f32 %v177_v51, %v153_v1  ;;  %v253_v57 = vmax.f32 %v249_v43, %v251_v53  ;;  %v327_v58 = vmul.f32 0.01, %v325_v22  ;;  %v144_v59 = vmul.f32 %v1012_v7, %v1082_v36 }
  0xbd   :  { %v344_v61 = vadd.f32 %v330_v2, %v306_v54  ;;  %v291_v28 = vmax.f32 %v287_v50, %v289_v33  ;;  %v363_v29 = vadd.f32 %v361_v55, %v1146_v46  ;;  %v112_v0 = vadd.f32 %v110_v56, %v1090_v39 }
  0xbe   :  { %v229_v5 = vadd.f32 %v215_v52, %v191_v34  ;;  %v329_v60 = vmax.f32 %v325_v22, %v327_v58  ;;  %v146_v17 = vadd.f32 %v144_v59, %v1094_v40  ;;  %v182_v35 = vmul.f32 %v1014_v8, %v1082_v36 }
  0xbf   :  { %v382_v18 = vadd.f32 %v368_v63, %v344_v61  ;;  %v365_v19 = vmul.f32 0.01, %v363_v29  ;;  %v114_v20 = vadd.f32 %v112_v0, %v1126_v62  ;;  %v220_v24 = vmul.f32 %v1016_v9, %v1082_v36 }
  0xc0   :  { %v267_v2 = vadd.f32 %v253_v57, %v229_v5  ;;  %v148_v25 = vadd.f32 %v146_v17, %v1126_v62  ;;  %v184_v30 = vadd.f32 %v182_v35, %v1098_v41  ;;  %v256_v39 = vmul.f32 %v1086_v38, %v1028_v15  ;;  %v1283_v35 = vld [vmem:[#allocation13_spill] sm:$0xff] }
  0xc1   :  { %809 = vmatprep.subr.mxu0 %v382_v18  ;;  %v367_v40 = vmax.f32 %v363_v29, %v365_v19  ;;  %v116_v3 = vmul.f32 0.01, %v114_v20  ;;  %v222_v31 = vadd.f32 %v220_v24, %v1102_v42  ;;  %v258_v63 = vmul.f32 %v1018_v10, %v1082_v36 }
  0xc2   :  { %810 = vmatpush3.msra.mxu0 %v382_v18  ;;  %v305_v4 = vadd.f32 %v291_v28, %v267_v2  ;;  %v150_v26 = vmul.f32 0.01, %v148_v25  ;;  %v186_v23 = vadd.f32 %v184_v30, %v1126_v62  ;;  %v294_v27 = vmul.f32 %v1112_v47, %v1028_v15  ;;  %v1285_v30 = vld [vmem:[#allocation14_spill] sm:$0xff] }
  0xc3   :  { %v118_v41 = vmax.f32 %v114_v20, %v116_v3  ;;  %v224_v43 = vadd.f32 %v222_v31, %v1126_v62  ;;  %v260_v44 = vadd.f32 %v258_v63, %v256_v39  ;;  %v296_v45 = vmul.f32 %v1020_v11, %v1082_v36 }
  0xc4   :  { %v343_v1 = vadd.f32 %v329_v60, %v305_v4  ;;  %v152_v42 = vmax.f32 %v148_v25, %v150_v26  ;;  %v188_v50 = vmul.f32 0.01, %v186_v23  ;;  %v332_v32 = vmul.f32 %v1114_v48, %v1028_v15 }
  0xc5   :  { %v226_v51 = vmul.f32 0.01, %v224_v43  ;;  %v262_v52 = vadd.f32 %v260_v44, %v1126_v62  ;;  %v298_v53 = vadd.f32 %v296_v45, %v294_v27  ;;  %v334_v22 = vmul.f32 %v1022_v12, %v1082_v36 }
  0xc6   :  { %v381_v54 = vadd.f32 %v367_v40, %v343_v1  ;;  %v156_v33 = vadd.f32 %v152_v42, %v118_v41  ;;  %v190_v55 = vmax.f32 %v186_v23, %v188_v50  ;;  %v370_v56 = vmul.f32 %v1116_v49, %v1028_v15 }
  0xc7   :  { %v228_v34 = vmax.f32 %v224_v43, %v226_v51  ;;  %v264_v57 = vmul.f32 0.01, %v262_v52  ;;  %v300_v58 = vadd.f32 %v298_v53, %v1126_v62  ;;  %v336_v59 = vadd.f32 %v334_v22, %v332_v32 }
  0xc8   :  { %811 = vmatprep.subr.mxu0 %v381_v54  ;;  %v194_v61 = vadd.f32 %v190_v55, %v156_v33  ;;  %v372_v28 = vmul.f32 %v1024_v13, %v1082_v36  ;;  %v107_v29 = vmul.f32 %v1030_v16, %v1026_v14  ;;  %v109_v0 = vmul.f32 %v1010_v6, %v1084_v37  ;;  %v1284_v6 = vld [vmem:[#allocation15_spill] sm:$0xff] }
  0xc9   :  { %812 = vmatpush3.msra.mxu0 %v381_v54  ;;  %v266_v5 = vmax.f32 %v262_v52, %v264_v57  ;;  %v302_v60 = vmul.f32 0.01, %v300_v58  ;;  %v338_v15 = vadd.f32 %v336_v59, %v1126_v62  ;;  %v141_v17 = vmul.f32 %v1040_v21, %v1026_v14 }
  0xca   :  { %814 = vmatmul.mubr.msk.f32.vlgmr.msra.gmra.mxu0 %vm393_vm0, %v1283_v35  ;;  %v232_v18 = vadd.f32 %v228_v34, %v194_v61  ;;  %v374_v19 = vadd.f32 %v372_v28, %v370_v56  ;;  %v111_v36 = vadd.f32 %v109_v0, %v107_v29  ;;  %v143_v16 = vmul.f32 %v1012_v7, %v1084_v37  ;;  %v1286_v7 = vld [vmem:[#allocation16_spill] sm:$0xff] }
  0xcb   :  { %v304_v20 = vmax.f32 %v300_v58, %v302_v60  ;;  %v340_v24 = vmul.f32 0.01, %v338_v15  ;;  %v179_v2 = vmul.f32 %v1284_v6, %v1026_v14  ;;  %v181_v25 = vmul.f32 %v1014_v8, %v1084_v37  ;;  %827 = vmatprep.mubr.msk.f32.mxu0 %vm393_vm0, %v1285_v30 }
  0xcc   :  { %v270_v21 = vadd.f32 %v266_v5, %v232_v18  ;;  %v376_v39 = vadd.f32 %v374_v19, %v1126_v62  ;;  %v113_v40 = vadd.f32 %v111_v36, %v1146_v46  ;;  %v145_v3 = vadd.f32 %v143_v16, %v141_v17 }
  0xcd   :  { %v342_v31 = vmax.f32 %v338_v15, %v340_v24  ;;  %v183_v63 = vadd.f32 %v181_v25, %v179_v2  ;;  %v217_v4 = vmul.f32 %v1286_v7, %v1026_v14  ;;  %v219_v26 = vmul.f32 %v1016_v9, %v1084_v37  ;;  %v482_v24 = vpop.permute.xlu0 %481  ;;  %v391_v2 = vpop.permute.xlu1 %390 }
  0xce   :  { %v308_v23 = vadd.f32 %v304_v20, %v270_v21  ;;  %v378_v27 = vmul.f32 0.01, %v376_v39  ;;  %v115_v8 = vmul.f32 0.01, %v113_v40  ;;  %v147_v41 = vadd.f32 %v145_v3, %v1146_v46  ;;  %820 = vmatprep.mubr.msk.f32.mxu1 %vm393_vm0, %v482_v24 }
  0xcf   :  { %v185_v43 = vadd.f32 %v183_v63, %v1146_v46  ;;  %v221_v44 = vadd.f32 %v219_v26, %v217_v4  ;;  %v255_v62 = vmul.f32 %v1086_v38, %v1026_v14  ;;  %v257_v45 = vmul.f32 %v1018_v10, %v1084_v37 }
  0xd0   :  { %v346_v1 = vadd.f32 %v342_v31, %v308_v23  ;;  %v380_v42 = vmax.f32 %v376_v39, %v378_v27  ;;  %v117_v50 = vmax.f32 %v113_v40, %v115_v8  ;;  %v149_v32 = vmul.f32 0.01, %v147_v41 }
  0xd1   :  { %v187_v51 = vmul.f32 0.01, %v185_v43  ;;  %v223_v9 = vadd.f32 %v221_v44, %v1146_v46  ;;  %v259_v52 = vadd.f32 %v257_v45, %v255_v62  ;;  %v293_v53 = vmul.f32 %v1112_v47, %v1026_v14  ;;  %v387_v25 = vpop.permute.xlu1 %386 }
  0xd2   :  { %v384_v22 = vadd.f32 %v380_v42, %v346_v1  ;;  %v151_v54 = vmax.f32 %v147_v41, %v149_v32  ;;  %v295_v33 = vmul.f32 %v1020_v11, %v1084_v37  ;;  %v331_v38 = vmul.f32 %v1114_v48, %v1026_v14 }
  0xd3   :  { %v189_v10 = vmax.f32 %v185_v43, %v187_v51  ;;  %v225_v55 = vmul.f32 0.01, %v223_v9  ;;  %v261_v56 = vadd.f32 %v259_v52, %v1146_v46  ;;  %v333_v34 = vmul.f32 %v1022_v12, %v1084_v37 }
  0xd4   :  { %823 = vmatprep.subr.mxu0 %v384_v22  ;;  %v155_v57 = vadd.f32 %v151_v54, %v117_v50  ;;  %v297_v58 = vadd.f32 %v295_v33, %v293_v53  ;;  %v369_v47 = vmul.f32 %v1116_v49, %v1026_v14  ;;  %v371_v59 = vmul.f32 %v1024_v13, %v1084_v37 }
  0xd5   :  { %824 = vmatpush3.msra.mxu0 %v384_v22  ;;  %v263_v11 = vmul.f32 0.01, %v261_v56  ;;  %v335_v61 = vadd.f32 %v333_v34, %v331_v38  ;;  %v227_v28 = vmax.f32 %v223_v9, %v225_v55  ;;  %v957_v6 = vmov 36   ;;  %v484_v31 = vpop.permute.xlu1 %483 }
  0xd6   :  { %v193_v48 = vadd.f32 %v189_v10, %v155_v57  ;;  %v299_v29 = vadd.f32 %v297_v58, %v1146_v46  ;;  %v373_v0 = vadd.f32 %v371_v59, %v369_v47  ;;  %858 = vset.pattern.permute.xlu1 %v957_v6  ;;  %857 = vset.pattern.permute.xlu0 %v957_v6  ;;  %v585_v33 = vstv %s1270_s2  ;;  %s959_s2 = smov [#allocation9]  }
  0xd7   :  { %v337_v5 = vadd.f32 %v335_v61, %v1146_v46  ;;  %v265_v60 = vmax.f32 %v261_v56, %v263_v11  ;;  %478 = vperm.xlu1 %858, %v1283_v35   ;;  %474 = vperm.xlu0 %857, %v1285_v30   ;;  %s759_s6 = sshll.u32 %s959_s2, 4  ;;  %s760_s6 = int_to_ptr.vmem [resolvable:$true] %s759_s6 }
  0xd8   :  { %v231_v12 = vadd.f32 %v227_v28, %v193_v48  ;;  %v301_v15 = vmul.f32 0.01, %v299_v29  ;;  %v375_v17 = vadd.f32 %v373_v0, %v1146_v46  ;;  %v958_v46 = vmov 37   ;;  %s921_s7 = scalar_lea.vmem %s760_s6, 32  ;;  %p926_p2 = scmp.lt.s32.totalorder %s760_s6, %s760_s6 }
  0xd9   :  { %v339_v18 = vmul.f32 0.01, %v337_v5  ;;  %p922_p1 = scmp.ne.s32.totalorder %s760_s6, %s921_s7  ;;  %p927_p3 = scmp.lt.s32.totalorder %s921_s7, %s921_s7 }
  0xda   :  { %v269_v14 = vadd.f32 %v265_v60, %v231_v12  ;;  %v303_v49 = vmax.f32 %v299_v29, %v301_v15  ;;  %v377_v19 = vmul.f32 0.01, %v375_v17 }
  0xdb   :  { %v341_v37 = vmax.f32 %v337_v5, %v339_v18  ;;  %860 = vset.pattern.permute.xlu0 %v958_v46  ;;  %859 = vset.pattern.permute.xlu1 %v958_v46  ;;  %p928_p4 = por %p927_p3, %p926_p2 }
  0xdc   :  { %v307_v13 = vadd.f32 %v303_v49, %v269_v14  ;;  %v379_v16 = vmax.f32 %v375_v17, %v377_v19  ;;  %573 = vperm.xlu0 %860, %v1283_v35   ;;  %569 = vperm.xlu1 %859, %v1285_v30  }
  0xdd   :  { %p929_p5 = pnand %p928_p4, %p922_p1 }
  0xde   :  { %v345_v36 = vadd.f32 %v341_v37, %v307_v13 }
  0xe0   :  { %v383_v20 = vadd.f32 %v379_v16, %v345_v36 }
  0xe2   :  { %825 = vmatprep.subr.mxu0 %v383_v20 }
  0xe3   :  { %826 = vmatpush3.msra.mxu0 %v383_v20 }
  0xe4   :  { %828 = vmatmul.mubr.msk.f32.vlgmr.msra.gmra.mxu0 %vm393_vm0, %v1283_v35 }
 0x152   :  { %v479_v30 = vpop.permute.xlu1 %478  ;;  %v475_v23 = vpop.permute.xlu0 %474 }
 0x157   :  { %v574_v45 = vpop.permute.xlu0 %573  ;;  %v570_v1 = vpop.permute.xlu1 %569 }
 0x18a   :  { %v815_v21 = vpop.f32.mrf.mxu0 }
 0x18b   :  { %v470_v39 = vadd.f32 %v815_v21, %v391_v2 }
 0x18c   :  { %v464_v40 = vpop.f32.mrf.mxu0 }
 0x18d   :  { %v465_v3 = vadd.f32 %v464_v40, %v387_v25  ;;  %816 = vmatprep.subr.mxu1 %v470_v39 }
 0x18e   :  { %817 = vmatpush3.msra.mxu1 %v470_v39 }
 0x18f   :  { %818 = vmatprep.subr.mxu1 %v465_v3 }
 0x190   :  { %819 = vmatpush3.msra.mxu1 %v465_v3 }
 0x191   :  { %821 = vmatmul.mubr.msk.f32.vlgmr.msra.gmra.mxu1 %vm393_vm0, %v484_v31 }
 0x192   :  { %834 = vmatprep.mubr.msk.f32.mxu1 %vm393_vm0, %v482_v24 }
 0x1a4   :  { %v829_v63 = vpop.f32.mrf.mxu0 }
 0x1a5   :  { %v660_v7 = vadd.f32 %v829_v63, %v391_v2 }
 0x1a6   :  { %v654_v35 = vpop.f32.mrf.mxu0 }
 0x1a7   :  { %v655_v4 = vadd.f32 %v654_v35, %v387_v25  ;;  %830 = vmatprep.subr.mxu1 %v660_v7 }
 0x1a8   :  { %831 = vmatpush3.msra.mxu1 %v660_v7 }
 0x1a9   :  { %832 = vmatprep.subr.mxu1 %v655_v4 }
 0x1aa   :  { %833 = vmatpush3.msra.mxu1 %v655_v4 }
 0x1ab   :  { %835 = vmatmul.mubr.msk.f32.vlgmr.msra.gmra.mxu1 %vm393_vm0, %v484_v31 }
 0x251   :  { %v822_v26 = vpop.f32.mrf.mxu1 }
 0x252   :  { %v561_v27 = vadd.f32 %v822_v26, %v479_v30 }
 0x253   :  { %v555_v8 = vpop.f32.mrf.mxu1 }
 0x254   :  { %v565_v41 = vmul.f32 0.01, %v561_v27  ;;  %v556_v43 = vadd.f32 %v555_v8, %v475_v23 }
 0x256   :  { %v564_v44 = vmul.f32 0.01, %v556_v43  ;;  %v567_v62 = vmax.f32 %v561_v27, %v565_v41 }
 0x258   :  { %v566_v42 = vmax.f32 %v556_v43, %v564_v44  ;;  %v577_v50 = vmul.f32 %v574_v45, %v567_v62 }
 0x25a   :  { %v576_v32 = vmul.f32 %v570_v1, %v566_v42 }
 0x25c   :  { %v578_v51 = vadd.f32 %v577_v50, %v576_v32 }
 0x25e   :  { %v579_v9 = vrot.slane %v578_v51, 4 }
 0x260   :  { %v580_v52 = vadd.f32 %v579_v9, %v578_v51 }
 0x262   :  { %v581_v53 = vrot.slane %v580_v52, 2 }
 0x264   :  { %v582_v22 = vadd.f32 %v581_v53, %v580_v52 }
 0x266   :  { %v583_v54 = vrot.slane %v582_v22, 1 }
 0x268   :  { %v584_v38 = vadd.f32 %v583_v54, %v582_v22 }
 0x26a   :  { %v586_v10 = vadd.f32 %v585_v33, %v584_v38 }
 0x26b   :  { %v836_v55 = vpop.f32.mrf.mxu1 }
 0x26c   :  { %v735_v56 = vadd.f32 %v836_v55, %v479_v30  ;;  %587 = vst [vmem:[#allocation9] sm:$0x1] %v586_v10 }
 0x26d   :  { %v729_v34 = vpop.f32.mrf.mxu1 }
 0x26e   :  { %v739_v57 = vmul.f32 0.01, %v735_v56  ;;  %v730_v58 = vadd.f32 %v729_v34, %v475_v23 }
 0x270   :  { %v741_v47 = vmax.f32 %v735_v56, %v739_v57  ;;  %v738_v59 = vmul.f32 0.01, %v730_v58 }
 0x272   :  { %v740_v11 = vmax.f32 %v730_v58, %v738_v59  ;;  %v743_v61 = vmul.f32 %v741_v47, %v574_v45 }
 0x274   :  { %v742_v48 = vmul.f32 %v740_v11, %v570_v1 }
 0x276   :  { %v744_v28 = vadd.f32 %v743_v61, %v742_v48 }
 0x278   :  { %v745_v29 = vrot.slane %v744_v28, 4 }
 0x27a   :  { %v746_v0 = vadd.f32 %v745_v29, %v744_v28 }
 0x27c   :  { %v747_v5 = vrot.slane %v746_v0, 2 }
 0x27e   :  { %v748_v12 = vadd.f32 %v747_v5, %v746_v0 }
 0x280   :  { %v749_v60 = vrot.slane %v748_v12, 1 }
 0x282   :  { %v750_v15 = vadd.f32 %v749_v60, %v748_v12 }
 0x284   :  { %v751_v17 = vadd.f32 %v750_v15, %v585_v33 }
 0x286   :  { %752 = vst [vmem:[#allocation9 + $0x1] sm:$0x1] %v751_v17 }
 0x287   :  { %932 = shalt.err (!%p929_p5)
}
 0x288   :  { %762 = dma.vmem_to_hbm [thread:$0]  %s760_s6, 32, %s1272_s4, [#allocation5]  }
 0x289   :  { %945 = dma.done.wait [#allocation5], 32  }
 0x28a   :  { %946 = vsyncadd [#allocation5], 4294967264 }
 0x28b   :  { %766 = vsyncpa [#allocation4], 1 }
 0x28c   :  { %767 = vsyncpa [#allocation7], 1 }
 0x28d   :  { %768 = vsyncpa [#allocation5], 1 }

</bundles_post_ra>
